<compile_context>
chip_gen: v5e
topology: v5e:2x2
jax: 0.10.0
libtpu: 0.0.40
codegen_flags: <defaults>
</compile_context>

<pallas_src>
import functools

import jax
import jax.numpy as jnp
from jax import lax
from jax.experimental import pallas as pl
from jax.experimental.pallas import tpu as pltpu

GAP = 0.1                       # NW gap penalty (matches the PyTorch module)
EPS = 1e-12                     # F.normalize eps
VMEM_LIMIT = 32 * 1024 * 1024   # fits v5e (128 MiB phys) .. v7x (64 MiB phys)


def _round_up(x, m):
    return ((x + m - 1) // m) * m


def _pick_tile(p, cap, align, prefer_steps=1):
    """Return (tile, padded): tile % align == 0, tile <= cap, tile | padded.

    prefer_steps > 1 keeps at least that many grid steps along the axis when
    the (aligned) extent allows it, so v7x's two TensorCores both get work.
    """
    pa = _round_up(max(p, 1), align)
    t = min(pa, cap)
    if prefer_steps > 1:
        t = min(t, _round_up(-(-pa // prefer_steps), align))
    t = max(t, align)
    return t, _round_up(pa, t)


# ----------------------------- Pallas kernels ------------------------------

def _score_kernel(d1_ref, d2_ref, v1_ref, v2_ref, out_ref):
    """Cosine scores for one (TM, TN) tile. d1 point-major, d2 channel-major."""
    d1 = d1_ref[...].astype(jnp.float32)                 # (TM, D)
    d2 = d2_ref[...].astype(jnp.float32)                 # (D, TN)
    # rsqrt-multiply normalization (EUP) instead of sqrt + divide (VALU).
    inv1 = lax.rsqrt(jnp.maximum(jnp.sum(d1 * d1, axis=1, keepdims=True), EPS * EPS))
    inv2 = lax.rsqrt(jnp.maximum(jnp.sum(d2 * d2, axis=0, keepdims=True), EPS * EPS))
    # bf16 MXU operands, f32 accumulation; normalization math stays in f32.
    d1n = (d1 * inv1).astype(jnp.bfloat16)
    d2n = (d2 * inv2).astype(jnp.bfloat16)
    s = jnp.dot(d1n, d2n, preferred_element_type=jnp.float32)   # (TM, TN) f32
    mask = (v1_ref[...] > 0.5) & (v2_ref[...] > 0.5)            # (TM,1)&(1,TN)
    out_ref[...] = jnp.where(mask, s, -1.0).astype(out_ref.dtype)


def _line_score_kernel(sc_ref, out_ref, *, n):
    """Averaged line saliency.

    sc_ref: (n*n, TM, TN) bf16 tile with row index = a*n + b (a: sample of
    line1, b: sample of line2); lines live on the (sublane, lane) axes so all
    maxima and masked means are full-vreg VPU ops over the leading axis.
    """
    def reduce_dir(outer_stride, inner_stride):
        ssum = None
        cnt = None
        for a in range(n):
            mx = None
            for b in range(n):
                v = sc_ref[a * outer_stride + b * inner_stride].astype(jnp.float32)
                mx = v if mx is None else jnp.maximum(mx, v)
            vld = (mx != -1.0).astype(jnp.float32)
            contrib = mx * vld
            ssum = contrib if ssum is None else ssum + contrib
            cnt = vld if cnt is None else cnt + vld
        return ssum / jnp.maximum(cnt, 1.0)          # guard against 0/0 -> NaN

    ls1 = reduce_dir(n, 1)   # max over line2 samples, masked mean over line1 samples
    ls2 = reduce_dir(1, n)   # max over line1 samples, masked mean over line2 samples
    out_ref[...] = (ls1 + ls2) * 0.5


def _nw_kernel(s_ref, out_ref, *, n, m):
    """Batched Needleman-Wunsch DP.

    s_ref: (n*m, 8, TB) bf16 — candidate batch packed on (8, lane) vregs;
    out_ref: (8, TB) f32.  DP accumulation is f32.  n = m = num_samples
    (default 5) so the static unroll stays small (~48 live vregs at TB=512).
    """
    zero = jnp.zeros(out_ref.shape, jnp.float32)
    prev = [zero] * (m + 1)
    for i in range(n):
        cur = [zero]
        for j in range(m):
            sij = s_ref[i * m + j].astype(jnp.float32) - GAP          # (8, TB)
            val = jnp.maximum(jnp.maximum(cur[j], prev[j + 1]), prev[j] + sij)
            cur.append(val)
        prev = cur
    out_ref[...] = prev[m]


# ----------------------------- Pallas wrappers ------------------------------

def pallas_scores(d1_pd, d2_dp, valid1, valid2):
    """d1_pd: (P1, D) point-major; d2_dp: (D, P2). Returns (P1, P2) bf16 scores."""
    P1, D = d1_pd.shape
    P2 = d2_dp.shape[1]
    TM, P1p = _pick_tile(P1, 512, 16, prefer_steps=2)   # sublane rows (bf16-safe)
    TN, P2p = _pick_tile(P2, 1024, 128)                 # lane-dense output columns

    d1p = jnp.zeros((P1p, D), jnp.bfloat16).at[:P1].set(d1_pd.astype(jnp.bfloat16))
    d2p = jnp.zeros((D, P2p), jnp.bfloat16).at[:, :P2].set(d2_dp.astype(jnp.bfloat16))
    v1 = jnp.zeros((P1p, 1), jnp.float32).at[:P1, 0].set(valid1.astype(jnp.float32))
    v2 = jnp.zeros((1, P2p), jnp.float32).at[0, :P2].set(valid2.astype(jnp.float32))

    out = pl.pallas_call(
        _score_kernel,
        out_shape=jax.ShapeDtypeStruct((P1p, P2p), jnp.bfloat16),
        grid=(P1p // TM, P2p // TN),
        in_specs=[
            pl.BlockSpec((TM, D), lambda i, j: (i, 0)),
            pl.BlockSpec((D, TN), lambda i, j: (0, j)),
            pl.BlockSpec((TM, 1), lambda i, j: (i, 0)),
            pl.BlockSpec((1, TN), lambda i, j: (0, j)),
        ],
        out_specs=pl.BlockSpec((TM, TN), lambda i, j: (i, j)),
        compiler_params=pltpu.CompilerParams(
            dimension_semantics=("parallel", "parallel"),
            vmem_limit_bytes=VMEM_LIMIT),
    )(d1p, d2p, v1, v2)
    return out[:P1, :P2]


def pallas_line_scores(scores, n1, n2, ns):
    """scores: (n1*ns, n2*ns) bf16 cosine matrix -> (n1, n2) f32 line saliency.

    Single fused permute builds the lane-dense (ns*ns, M, N) slab; lines sit on
    (sublane, lane), samples are unrolled on the leading axis.
    """
    M, N = n1, n2
    nn = ns * ns
    TM, Mp = _pick_tile(M, 128, 16, prefer_steps=2)
    TN, Np = _pick_tile(N, 512, 128)

    sc = scores.reshape(n1, ns, n2, ns).transpose(1, 3, 0, 2).reshape(nn, M, N)
    sc = jnp.zeros((nn, Mp, Np), scores.dtype).at[:, :M, :N].set(sc)

    out = pl.pallas_call(
        functools.partial(_line_score_kernel, n=ns),
        out_shape=jax.ShapeDtypeStruct((Mp, Np), jnp.float32),
        grid=(Mp // TM, Np // TN),
        in_specs=[pl.BlockSpec((nn, TM, TN), lambda i, j: (0, i, j))],
        out_specs=pl.BlockSpec((TM, TN), lambda i, j: (i, j)),
        compiler_params=pltpu.CompilerParams(
            dimension_semantics=("parallel", "parallel"),
            vmem_limit_bytes=VMEM_LIMIT),
    )(sc)
    return out[:M, :N]


def pallas_needleman_wunsch(scores):
    """scores: (B, n, m) -> (B,) f32 NW alignment score (batch on full vregs)."""
    B, n, m = scores.shape
    lanes = max(_round_up(-(-B // 8), 128), 128)   # adaptive lane padding
    TB = min(512, lanes)
    Bc = _round_up(lanes, TB)
    Bp = 8 * Bc

    s = jnp.zeros((Bp, n, m), jnp.bfloat16).at[:B].set(scores.astype(jnp.bfloat16))
    # batch b -> (sublane, lane) = (b // Bc, b % Bc)
    s = jnp.transpose(s.reshape(8, Bc, n, m), (2, 3, 0, 1)).reshape(n * m, 8, Bc)

    out = pl.pallas_call(
        functools.partial(_nw_kernel, n=n, m=m),
        out_shape=jax.ShapeDtypeStruct((8, Bc), jnp.float32),
        grid=(Bc // TB,),
        in_specs=[pl.BlockSpec((n * m, 8, TB), lambda b: (0, 0, b))],
        out_specs=pl.BlockSpec((8, TB), lambda b: (0, b)),
        compiler_params=pltpu.CompilerParams(
            dimension_semantics=("parallel",),
            vmem_limit_bytes=VMEM_LIMIT),
    )(s)
    return out.reshape(Bp)[:B]


# ------------------------------- JAX glue -----------------------------------

def keypoints_to_grid(keypoints, img_size):
    """(P, 2) ij keypoints -> (P, 2) normalized xy (kornia normalize_pixel_coordinates)."""
    H, W = img_size
    x = keypoints[:, 1] * (2.0 / (W - 1)) - 1.0
    y = keypoints[:, 0] * (2.0 / (H - 1)) - 1.0
    return jnp.stack([x, y], axis=-1)


def _grid_sample_bilinear(img, grid_xy):
    """torch.nn.functional.grid_sample (bilinear, zeros, align_corners=False).

    img: (D, H, W); grid_xy: (P, 2) normalized xy.  Returns (P, D) point-major.
    One flat row-gather (jnp.take on an (H*W, D) slab) per tap.
    """
    # TODO(synk): a Pallas scalar-prefetch DMA gather could overlap this stage
    # with the score matmul; kept in XLA for now.
    D, H, W = img.shape
    img_flat = jnp.transpose(img.reshape(D, H * W), (1, 0)).astype(jnp.float32)  # (H*W, D)
    x = ((grid_xy[:, 0] + 1.0) * W - 1.0) * 0.5
    y = ((grid_xy[:, 1] + 1.0) * H - 1.0) * 0.5
    x0 = jnp.floor(x)
    y0 = jnp.floor(y)
    x1 = x0 + 1.0
    y1 = y0 + 1.0
    wx1 = x - x0
    wx0 = 1.0 - wx1
    wy1 = y - y0
    wy0 = 1.0 - wy1

    def tap(ix, iy, w):
        valid = (ix >= 0) & (ix <= W - 1) & (iy >= 0) & (iy <= H - 1)
        ixc = jnp.clip(ix, 0, W - 1).astype(jnp.int32)
        iyc = jnp.clip(iy, 0, H - 1).astype(jnp.int32)
        vals = jnp.take(img_flat, iyc * W + ixc, axis=0)                 # (P, D)
        return vals * (w * valid.astype(jnp.float32))[:, None]

    return (tap(x0, y0, wx0 * wy0) + tap(x1, y0, wx1 * wy0)
            + tap(x0, y1, wx0 * wy1) + tap(x1, y1, wx1 * wy1))


class WunschLineMatcherPallas:
    """JAX/Pallas port of kornia's WunschLineMatcher (LineMatcherCfg-style)."""

    def __init__(self, cross_check=True, num_samples=5, min_dist_pts=8,
                 top_k_candidates=4, grid_size=8):
        self.cross_check = cross_check
        self.num_samples = num_samples
        self.min_dist_pts = min_dist_pts
        self.top_k_candidates = top_k_candidates
        self.grid_size = grid_size

    def sample_line_points(self, line_seg):
        """Vectorized equivalent of the per-n_samp loop in PyTorch."""
        start = line_seg[:, 0]                                # (N, 2)
        end = line_seg[:, 1]
        lengths = jnp.linalg.norm(start - end, axis=1)
        n_samp = jnp.clip(jnp.floor(lengths / self.min_dist_pts),
                          2, self.num_samples).astype(jnp.int32)
        t = jnp.arange(self.num_samples, dtype=jnp.float32)   # (S,)
        interval = (end - start) / (n_samp[:, None].astype(jnp.float32) - 1.0)
        pts = start[:, None, :] + t[None, :, None] * interval[:, None, :]
        valid = t[None, :] < n_samp[:, None].astype(jnp.float32)
        pts = jnp.where(valid[..., None], pts, 0.0)           # padding -> 0
        return pts, valid

    def _gather_candidates(self, scores_r, line_scores, swap):
        """Top-k (n,n) candidate blocks for one matching direction.

        scores_r: (N1, ns, N2, ns) view of the raw score matrix (no permute).
        line_scores: (M, N) saliency for this direction (transposed for dir 2).
        swap=True gathers direction-2 blocks straight from scores_r (swapped
        indices + trailing transpose) so the (1,0,3,2) permute never hits HBM.
        """
        M, N = line_scores.shape
        ns = scores_r.shape[1]
        k = min(self.top_k_candidates, N)
        _, topk = lax.top_k(line_scores, k)                    # (M, k) int32
        rows = jnp.arange(M)[:, None]
        if swap:
            top = scores_r[topk, :, rows, :]                   # (M, k, ns, ns)
            top = jnp.swapaxes(top, -1, -2)
        else:
            top = scores_r[rows, :, topk, :]                   # (M, k, ns, ns)
        top = jnp.concatenate([top, jnp.flip(top, axis=-1)], axis=1)   # (M, 2k, ns, ns)
        return top.reshape(M * 2 * k, ns, ns), topk

    @staticmethod
    def _finish_matches(nw, topk):
        M, k = topk.shape
        nw = nw.reshape(M, 2 * k)
        best = jnp.argmax(nw, axis=1) % k
        return topk[jnp.arange(M), best]

    def __call__(self, line_seg1, line_seg2, desc1, desc2):
        if line_seg1.shape[0] == 0:
            return jnp.zeros((0,), jnp.int32)
        if line_seg2.shape[0] == 0:
            return -jnp.ones((line_seg1.shape[0],), jnp.int32)

        gs = self.grid_size
        img_size1 = (desc1.shape[2] * gs, desc1.shape[3] * gs)
        img_size2 = (desc2.shape[2] * gs, desc2.shape[3] * gs)

        pts1, valid1 = self.sample_line_points(line_seg1)
        pts2, valid2 = self.sample_line_points(line_seg2)
        pts1 = pts1.reshape(-1, 2)
        pts2 = pts2.reshape(-1, 2)

        g1 = keypoints_to_grid(pts1, img_size1)
        g2 = keypoints_to_grid(pts2, img_size2)
        d1 = _grid_sample_bilinear(desc1[0], g1)              # (P1, D)
        d2 = _grid_sample_bilinear(desc2[0], g2)              # (P2, D)

        # MXU-friendly layout: lhs point-major (P1, D), rhs channel-major (D, P2).
        scores = pallas_scores(d1, d2.T,
                               valid1.reshape(-1), valid2.reshape(-1))   # (P1,P2) bf16

        N1, N2 = line_seg1.shape[0], line_seg2.shape[0]
        ns = self.num_samples
        scores_r = scores.reshape(N1, ns, N2, ns)             # free reshape

        # Line saliency is symmetric under the (1,0,3,2) permute -> compute once.
        line_scores = pallas_line_scores(scores, N1, N2, ns)  # (N1, N2) f32

        cand1, top1 = self._gather_candidates(scores_r, line_scores, swap=False)
        if self.cross_check:
            cand2, top2 = self._gather_candidates(scores_r, line_scores.T, swap=True)
            # Single batched NW call for both directions.
            nw_all = pallas_needleman_wunsch(
                jnp.concatenate([cand1, cand2], axis=0))
            nw1 = nw_all[:cand1.shape[0]]
            nw2 = nw_all[cand1.shape[0]:]
            matches = self._finish_matches(nw1, top1)
            matches2 = self._finish_matches(nw2, top2)
            mutual = matches2[matches] == jnp.arange(N1)
            matches = jnp.where(mutual, matches, -1)
        else:
            matches = self._finish_matches(pallas_needleman_wunsch(cand1), top1)
        return matches.astype(jnp.int32)


class SOLD2Pallas:
    """Pallas-backed SOLD2 wrapper (match() path only)."""

    def __init__(self, grid_size=8, num_samples=5, min_dist_pts=8,
                 top_k_candidates=4, cross_check=True):
        self.grid_size = grid_size
        self.line_matcher = WunschLineMatcherPallas(
            cross_check=cross_check, num_samples=num_samples,
            min_dist_pts=min_dist_pts, top_k_candidates=top_k_candidates,
            grid_size=grid_size)

    def match(self, line_seg1, line_seg2, desc1, desc2):
        return self.line_matcher(line_seg1, line_seg2, desc1, desc2)

    def forward(self, img):
        # TODO(synk): SOLD2Net backbone, junction/line heatmap decoding and the
        # line detector are not in the provided reference source; not implemented.
        raise NotImplementedError("SOLD2 backbone not provided in reference source")


# --------------------------------- main --------------------------------------

if __name__ == "__main__":
    key = jax.random.PRNGKey(0)
    k1, k2, k3, k4 = jax.random.split(key, 4)

    D, Hc, Wc = 32, 16, 16          # small descriptor map (1, D, H/4, W/4)
    grid_size = 8
    H_img = Hc * grid_size          # 128
    n_lines1, n_lines2 = 6, 5

    # line segments in ij (row, col) convention inside the image
    line_seg1 = jax.random.uniform(k1, (n_lines1, 2, 2), dtype=jnp.float32,
                                   minval=0.0, maxval=float(H_img - 1))
    line_seg2 = jax.random.uniform(k2, (n_lines2, 2, 2), dtype=jnp.float32,
                                   minval=0.0, maxval=float(H_img - 1))
    desc1 = jax.random.normal(k3, (1, D, Hc, Wc), dtype=jnp.float32)
    desc2 = jax.random.normal(k4, (1, D, Hc, Wc), dtype=jnp.float32)

    sold2 = SOLD2Pallas(grid_size=grid_size, num_samples=5, min_dist_pts=8,
                        top_k_candidates=4, cross_check=True)
    matches = sold2.match(line_seg1, line_seg2, desc1, desc2)
    jax.block_until_ready(matches)
    assert matches.shape == (n_lines1,)
    print("KERNEL_OK")
</pallas_src>

<mosaic_0001>
module attributes {stable_mosaic.version = 11 : i64} {
  func.func @_score_kernel(%arg0: i32, %arg1: i32, %arg2: memref<16x32xbf16, #tpu.memory_space<vmem>>, %arg3: memref<32x128xbf16, #tpu.memory_space<vmem>>, %arg4: memref<16x1xf32, #tpu.memory_space<vmem>>, %arg5: memref<1x128xf32, #tpu.memory_space<vmem>>, %arg6: memref<16x128xbf16, #tpu.memory_space<vmem>>) attributes {dimension_semantics = [#tpu.dimension_semantics<parallel>, #tpu.dimension_semantics<parallel>], iteration_bounds = array<i64: 2, 1>, scalar_prefetch = 0 : i64, scratch_operands = 0 : i64, tpu.core_type = #tpu.core_type<tc>, window_params = [{transform_indices = @transform_0, window_bounds = array<i64: 16, 32>}, {transform_indices = @transform_1, window_bounds = array<i64: 32, 128>}, {transform_indices = @transform_2, window_bounds = array<i64: 16, 1>}, {transform_indices = @transform_3, window_bounds = array<i64: 1, 128>}, {transform_indices = @transform_4, window_bounds = array<i64: 16, 128>}]} {
    %c0 = arith.constant 0 : index
    %c0_0 = arith.constant 0 : index
    %0 = vector.load %arg2[%c0, %c0_0] : memref<16x32xbf16, #tpu.memory_space<vmem>>, vector<16x32xbf16>
    %1 = arith.extf %0 : vector<16x32xbf16> to vector<16x32xf32>
    %c0_1 = arith.constant 0 : index
    %c0_2 = arith.constant 0 : index
    %2 = vector.load %arg3[%c0_1, %c0_2] : memref<32x128xbf16, #tpu.memory_space<vmem>>, vector<32x128xbf16>
    %3 = arith.extf %2 : vector<32x128xbf16> to vector<32x128xf32>
    %4 = arith.mulf %1, %1 : vector<16x32xf32>
    %cst = arith.constant dense<0.000000e+00> : vector<16xf32>
    %5 = vector.multi_reduction <add>, %4, %cst [1] : vector<16x32xf32> to vector<16xf32>
    %6 = vector.shape_cast %5 : vector<16xf32> to vector<16x1xf32>
    %cst_3 = arith.constant 1.000000e-24 : f32
    %7 = vector.broadcast %cst_3 : f32 to vector<16x1xf32>
    %8 = arith.maximumf %6, %7 : vector<16x1xf32>
    %9 = math.rsqrt %8 : vector<16x1xf32>
    %10 = arith.mulf %3, %3 : vector<32x128xf32>
    %cst_4 = arith.constant dense<0.000000e+00> : vector<128xf32>
    %11 = vector.multi_reduction <add>, %10, %cst_4 [0] : vector<32x128xf32> to vector<128xf32>
    %12 = vector.shape_cast %11 : vector<128xf32> to vector<1x128xf32>
    %cst_5 = arith.constant 1.000000e-24 : f32
    %13 = vector.broadcast %cst_5 : f32 to vector<1x128xf32>
    %14 = arith.maximumf %12, %13 : vector<1x128xf32>
    %15 = math.rsqrt %14 : vector<1x128xf32>
    %16 = vector.broadcast %9 : vector<16x1xf32> to vector<16x32xf32>
    %17 = arith.mulf %1, %16 : vector<16x32xf32>
    %18 = arith.truncf %17 : vector<16x32xf32> to vector<16x32xbf16>
    %19 = vector.broadcast %15 : vector<1x128xf32> to vector<32x128xf32>
    %20 = arith.mulf %3, %19 : vector<32x128xf32>
    %21 = arith.truncf %20 : vector<32x128xf32> to vector<32x128xbf16>
    %cst_6 = arith.constant dense<0.000000e+00> : vector<16x128xf32>
    %22 = tpu.matmul %18, %21, %cst_6 {dimension_numbers = #tpu.dot_dimension_numbers<[1], [0], [0], [1], [0, 0, 1, 1], [], []>} : vector<16x32xbf16>, vector<32x128xbf16>, vector<16x128xf32> -> vector<16x128xf32>
    %c0_7 = arith.constant 0 : index
    %c0_8 = arith.constant 0 : index
    %23 = vector.load %arg4[%c0_7, %c0_8] : memref<16x1xf32, #tpu.memory_space<vmem>>, vector<16x1xf32>
    %cst_9 = arith.constant 5.000000e-01 : f32
    %24 = vector.broadcast %cst_9 : f32 to vector<16x1xf32>
    %25 = arith.cmpf ogt, %23, %24 : vector<16x1xf32>
    %c0_10 = arith.constant 0 : index
    %c0_11 = arith.constant 0 : index
    %26 = vector.load %arg5[%c0_10, %c0_11] : memref<1x128xf32, #tpu.memory_space<vmem>>, vector<1x128xf32>
    %cst_12 = arith.constant 5.000000e-01 : f32
    %27 = vector.broadcast %cst_12 : f32 to vector<1x128xf32>
    %28 = arith.cmpf ogt, %26, %27 : vector<1x128xf32>
    %29 = vector.broadcast %25 : vector<16x1xi1> to vector<16x128xi1>
    %30 = vector.broadcast %28 : vector<1x128xi1> to vector<16x128xi1>
    %31 = arith.andi %29, %30 : vector<16x128xi1>
    %cst_13 = arith.constant -1.000000e+00 : f32
    %32 = vector.broadcast %cst_13 : f32 to vector<16x128xf32>
    %33 = arith.select %31, %22, %32 : vector<16x128xi1>, vector<16x128xf32>
    %34 = arith.truncf %33 : vector<16x128xf32> to vector<16x128xbf16>
    %c0_14 = arith.constant 0 : index
    %c0_15 = arith.constant 0 : index
    %35 = vector.load %arg6[%c0_14, %c0_15] : memref<16x128xbf16, #tpu.memory_space<vmem>>, vector<16x128xbf16>
    tpu.vector_store %arg6[%c0_14, %c0_15], %34 {strides = array<i32>} : memref<16x128xbf16, #tpu.memory_space<vmem>>, vector<16x128xbf16>,
    return
  }
  func.func @transform_0(%arg0: i32, %arg1: i32) -> (i32, i32) {
    %c0_i32 = arith.constant 0 : i32
    %c0_i32_0 = arith.constant 0 : i32
    return %arg0, %c0_i32 : i32, i32
  }
  func.func @transform_1(%arg0: i32, %arg1: i32) -> (i32, i32) {
    %c0_i32 = arith.constant 0 : i32
    %c0_i32_0 = arith.constant 0 : i32
    return %c0_i32, %arg1 : i32, i32
  }
  func.func @transform_2(%arg0: i32, %arg1: i32) -> (i32, i32) {
    %c0_i32 = arith.constant 0 : i32
    %c0_i32_0 = arith.constant 0 : i32
    return %arg0, %c0_i32 : i32, i32
  }
  func.func @transform_3(%arg0: i32, %arg1: i32) -> (i32, i32) {
    %c0_i32 = arith.constant 0 : i32
    %c0_i32_0 = arith.constant 0 : i32
    return %c0_i32, %arg1 : i32, i32
  }
  func.func @transform_4(%arg0: i32, %arg1: i32) -> (i32, i32) {
    %c0_i32 = arith.constant 0 : i32
    return %arg0, %arg1 : i32, i32
  }
}

</mosaic_0001>

<bundles_post_ra>
// kernel: tpu_custom_call.1
= control target key start
LH: loop header
LB: loop body
LE: loop exit
PB: predicated region body
PF: predicated region fallthrough
CT: control target
= control target key end

     0   :  { %9 = vsyncpa [#allocation3], 0  ;;  %s854_s0 = inlined_call_operand.vmem [shape: bf16[32,32], index: 0, kind: input, shape index: {}]   ;;  %s855_s1 = inlined_call_operand.vmem [shape: bf16[32,128], index: 1, kind: input, shape index: {}]   ;;  %s856_s2 = inlined_call_operand.vmem [shape: f32[32,1], index: 2, kind: input, shape index: {}]   ;;  %s857_s3 = inlined_call_operand.vmem [shape: f32[1,128], index: 3, kind: input, shape index: {}]   ;;  %s858_s4 = inlined_call_operand.hbm [shape: bf16[32,128], index: 4, kind: output, shape index: {}]  }
   0x1   :  { %11 = vsyncpa [#allocation3 + $0x1], 0  ;;  %s726_s15 = smov 0   ;;  %s728_s16 = smov 0  }
   0x2   :  { %s730_s17 = smov 0   ;;  %s732_s18 = smov 0  }
   0x3   :  { %s734_s19 = smov 0   ;;  %s736_s20 = smov 0  }
   0x4 LB: > { %s515_s21 = sadd.s32 4294967295, %s696_s20   ;;  %s516_s22 = sadd.s32 4294967294, %s696_s20   ;;  %s696_s20 = sphi %s736_s20, %s17_s20   ;;  %s692_s19 = sphi %s734_s19, %s865_s19   ;;  %s688_s18 = sphi %s732_s18, %s864_s18   ;;  %s684_s17 = sphi %s730_s17, %s863_s17   ;;  %s680_s16 = sphi %s728_s16, %s862_s16   ;;  %s676_s15 = sphi %s726_s15, %s861_s15  }
   0x5   : > { %s29_s23 = sadd.s32 1, %s692_s19  ;;  %s142_s24 = sadd.s32 1, %s684_s17 }
   0x6   : > { %p31_p0 = scmp.ge.s32.totalorder %s29_s23, 2  ;;  %p152_p1 = scmp.ne.s32.totalorder %s684_s17, %s680_s16 }
   0x7   : > { %p153_p2 = scmp.eq.s32.totalorder %s515_s21, 1  ;;  %p158_p3 = scmp.ne.s32.totalorder %s680_s16, %s676_s15 }
   0x8   : > { %s867_s23 = smov (%p31_p0, %s29_s23), 0  ;;  %p159_p5 = scmp.eq.s32.totalorder %s516_s22, 1 }
   0x9   : > { %p766_p4 = por %p153_p2, %p152_p1  ;;  %s137_s26 = ssub.s32 %s692_s19, %s867_s23 }
   0xa   : > { %p521_p6 = scmp.ge.s32.totalorder %s696_s20, 1  ;;  %p140_p7 = scmp.eq.s32.totalorder %s137_s26, 0 }
   0xb   : > { %p773_p8 = por %p159_p5, %p158_p3  ;;  %p208_p9 = scmp.lt.s32.totalorder %s696_s20, 3 }
   0xc   : > { %s779_s28 = scalar_select %p140_p7, %s684_s17, %s142_s24  }
   0xd   : > { %p209_p10 = pnand %p521_p6, %p208_p9 }
   0xe   : > { %s523_s29 = sshll.u32 (!%p209_p10), %s688_s18, 1  ;;  %s243_s26 = sand.u32 (!%p209_p10), 1, %s680_s16  }
   0xf   : > { %212 = sbr.rel (%p209_p10) target bundleno = 318 (0x13e), region = 36  ;;  %p247_p11 = scmp.lt.s32.totalorder (!%p209_p10), %s523_s29, 3 }
  0x14   : > { %s869_s29 = smov (!%p247_p11, %s523_s29), 3  ;;  %vm281_vm0 = vcmask 261120   ;;  %v539_v7 = vld [vmem:[%s855_s1] sm:$0xff]   ;;  %v551_v10 = vld [vmem:[%s855_s1 + $0x8] sm:$0xff]   ;;  %v698_v39 = vmov 0  }
  0x15   : > { %s524_s30 = sshll.u32 %s869_s29, 2  ;;  %v540_v8 = vunpack.c.l.bf16 %v539_v7  ;;  %v541_v9 = vunpack.c.h.bf16 %v539_v7  ;;  %v544_v11 = vunpack.c.l.bf16 %v551_v10  ;;  %v545_v14 = vunpack.c.h.bf16 %v551_v10  ;;  %s526_s12 = sshll.u32 %s869_s29, 3  ;;  %610 = vset.pattern.permute.xlu1 %v698_v39  ;;  %611 = vset.pattern.permute.xlu0 %v698_v39 }
  0x16   : > { %s250_s7 = scalar_lea.vmem %s854_s0, %s524_s30  ;;  %s260_s21 = scalar_lea.vmem %s856_s2, %s526_s12 }
  0x17   : > { %v535_v0 = vld [vmem:[%s250_s7] sm:$0xff]   ;;  %v310_v12 = vmul.f32 %v540_v8, %v540_v8  ;;  %v311_v13 = vmul.f32 %v541_v9, %v541_v9  ;;  %v312_v15 = vmul.f32 %v544_v11, %v544_v11  ;;  %v313_v17 = vmul.f32 %v545_v14, %v545_v14  ;;  %v361_v45 = vld [vmem:[%s260_s21 + $0x8] sm:$0xff]  ;;  %s522_s29 = sshll.u32 %s243_s26, 3  ;;  %s533_s30 = sshll.u32 %s688_s18, 3 }
  0x18   : > { %v788_v1 = vunpack.c.l.bf16 %v535_v0  ;;  %v792_v3 = vunpack.c.h.bf16 %v535_v0  ;;  %v360_v41 = vld [vmem:[%s260_s21] sm:$0xff]  ;;  %vm363_vm5 = vcmp.gt.f32.partialorder %v361_v45, 0.5  ;;  %s400_s7 = scalar_lea.hbm %s858_s4, %s533_s30  ;;  %s245_s8 = scalar_lea.vmem [#allocation2], %s522_s29 }
  0x19   : > { %v314_v16 = vadd.f32 %v311_v13, %v310_v12  ;;  %vm362_vm4 = vcmp.gt.f32.partialorder %v360_v41, 0.5  ;;  %v367_v46 = vsel %vm363_vm5, 1, %v698_v39  ;;  %s819_s9 = sshll.u32 %s245_s8, 4  ;;  %s403_s10 = sshll.u32 %s400_s7, 4  ;;  %s402_s9 = int_to_ptr.vmem [resolvable:$true] %s819_s9  ;;  %s404_s10 = int_to_ptr.hbm [resolvable:$true] %s403_s10 }
  0x1a   : > { %v279_v2 = vmul.f32 %v788_v1, %v788_v1  ;;  %v280_v5 = vmul.f32 %v792_v3, %v792_v3  ;;  %v366_v44 = vsel %vm362_vm4, 1, %v698_v39  ;;  %s388_s18 = scalar_lea.sflag [#allocation3], %s243_s26  ;;  %s632_s11 = sshra.s32 %s404_s10, 4  ;;  %s633_s11 = int_to_ptr.hbm [resolvable:$true] %s632_s11 }
  0x1b   : > { %v315_v18 = vadd.f32 %v314_v16, %v312_v15  ;;  %369 = vperm.xlu1 %610, %v366_v44   ;;  %s634_s12 = scalar_lea.hbm %s633_s11, 8  ;;  %s638_s21 = scalar_lea.hbm %s858_s4, 16 }
  0x1c   : > { %v282_v4 = vsel %vm281_vm0, %v279_v2, 0.0  ;;  %v285_v6 = vsel %vm281_vm0, %v280_v5, 0.0  ;;  %p635_p12 = scmp.ne.s32.totalorder %s633_s11, %s634_s12  ;;  %p639_p1 = scmp.lt.s32.totalorder %s633_s11, %s858_s4 }
  0x1d   : > { %283 = vadd.xlane.f32.xlu0 %v282_v4  ;;  %v316_v19 = vadd.f32 %v315_v18, %v313_v17  ;;  %v364_v4 = vld [vmem:[%s857_s3] sm:$0x1]  ;;  %p640_p2 = scmp.lt.s32.totalorder %s638_s21, %s634_s12 }
  0x1e   : > { %vm365_vm12 = vcmp.gt.f32.partialorder %v364_v4, 0.5  ;;  %p636_p13 = pnand %p635_p12, %p766_p4 }
  0x1f   : > { %v317_v20 = vrot.slane %v316_v19, 4  ;;  %p641_p3 = por %p640_p2, %p639_p1 }
  0x20   : > { %p637_p0 = pneg %p636_p13 }
  0x21   : > { %v318_v21 = vadd.f32 %v317_v20, %v316_v19 }
  0x22   : > { %p642_p5 = pnand %p641_p3, %p637_p0 }
  0x23   : > { %v319_v22 = vrot.slane %v318_v21, 2  ;;  %372 = vperm.xlu1 %610, %v367_v46  }
  0x25   : > { %286 = vadd.xlane.f32.xlu0 %v285_v6  ;;  %v320_v23 = vadd.f32 %v319_v22, %v318_v21  ;;  %v376_v6 = vsel %vm365_vm12, 1, %v698_v39 }
  0x26   : > { %v377_v7 = vperm.slane %v376_v6, 0 }
  0x27   : > { %v321_v24 = vrot.slane %v320_v23, 1 }
  0x28   : > { %vm378_vm14 = vcmp.eq.s32.totalorder %v377_v7, 1 }
  0x29   : > { %v322_v25 = vadd.f32 %v321_v24, %v320_v23 }
  0x2b   : > { %v323_v26 = vmax.f32 %v322_v25, 1e-24 }
  0x2d   : > { %612 = vrsqrt.f32 %v323_v26  ;;  %vm330_vm1 = vweird.f32 %v323_v26 }
  0x33   : > { %v613_v27 = vpop.eup %612 }
  0x34   : > { %v325_v28 = vmul.f32 %v613_v27, %v323_v26  ;;  %vm331_vm2 = vweird.f32 %v613_v27 }
  0x35   : > { %vm332_vm3 = vmor %vm330_vm1, %vm331_vm2 }
  0x36   : > { %v326_v29 = vmul.f32 %v613_v27, %v325_v28 }
  0x38   : > { %v327_v30 = vmul.f32 0.5, %v326_v29 }
  0x3a   : > { %v328_v31 = vsub.f32 1.5, %v327_v30 }
  0x3c   : > { %v329_v32 = vmul.f32 %v613_v27, %v328_v31 }
  0x3e   : > { %v333_v33 = vsel %vm332_vm3, %v613_v27, %v329_v32 }
  0x3f   : > { %v339_v34 = vmul.f32 %v544_v11, %v333_v33  ;;  %v340_v35 = vmul.f32 %v545_v14, %v333_v33  ;;  %v337_v37 = vmul.f32 %v540_v8, %v333_v33  ;;  %v338_v38 = vmul.f32 %v541_v9, %v333_v33 }
  0x41   : > { %v342_v36 = vpack.c.bf16 %v340_v35, %v339_v34  ;;  %v341_v40 = vpack.c.bf16 %v338_v38, %v337_v37 }
  0x43   : > { %352 = vmatpush.bf16.msra.mxu0 %v342_v36 }
  0x47   : > { %353 = vmatpush.bf16.msra.mxu0 %v341_v40 }
  0x8d   : > { %v370_v5 = vpop.permute.xlu1 %369 }
  0x8e   : > { %vm374_vm13 = vcmp.eq.s32.totalorder %v370_v5, 1 }
  0x90   : > { %v284_v42 = vpop.xlane.xlu0 %283 }
  0x91   : > { %v288_v43 = vmax.f32 %v284_v42, 1e-24 }
  0x93   : > { %614 = vrsqrt.f32 %v288_v43  ;;  %vm296_vm7 = vweird.f32 %v288_v43 }
  0x95   : > { %v373_v9 = vpop.permute.xlu1 %372 }
  0x96   : > { %vm375_vm15 = vcmp.eq.s32.totalorder %v373_v9, 1 }
  0x97   : > { %vm380_vm1 = vmand %vm375_vm15, %vm378_vm14 }
  0x98   : > { %v287_v47 = vpop.xlane.xlu0 %286 }
  0x99   : > { %v615_v48 = vpop.eup %614  ;;  %v289_v49 = vmax.f32 %v287_v47, 1e-24 }
  0x9a   : > { %v291_v50 = vmul.f32 %v615_v48, %v288_v43  ;;  %vm297_vm6 = vweird.f32 %v615_v48 }
  0x9b   : > { %616 = vrsqrt.f32 %v289_v49  ;;  %vm298_vm9 = vmor %vm296_vm7, %vm297_vm6  ;;  %vm306_vm10 = vweird.f32 %v289_v49 }
  0x9c   : > { %v292_v51 = vmul.f32 %v615_v48, %v291_v50 }
  0x9e   : > { %v293_v52 = vmul.f32 0.5, %v292_v51 }
  0xa0   : > { %v294_v54 = vsub.f32 1.5, %v293_v52 }
  0xa1   : > { %v617_v53 = vpop.eup %616 }
  0xa2   : > { %v301_v55 = vmul.f32 %v617_v53, %v289_v49  ;;  %v295_v57 = vmul.f32 %v615_v48, %v294_v54  ;;  %vm307_vm8 = vweird.f32 %v617_v53 }
  0xa3   : > { %vm308_vm11 = vmor %vm306_vm10, %vm307_vm8 }
  0xa4   : > { %v302_v56 = vmul.f32 %v617_v53, %v301_v55  ;;  %v299_v61 = vsel %vm298_vm9, %v615_v48, %v295_v57 }
  0xa5   : > { %v334_v63 = vmul.f32 %v788_v1, %v299_v61 }
  0xa6   : > { %v303_v58 = vmul.f32 0.5, %v302_v56 }
  0xa8   : > { %v304_v59 = vsub.f32 1.5, %v303_v58 }
  0xaa   : > { %v305_v60 = vmul.f32 %v617_v53, %v304_v59 }
  0xac   : > { %v309_v62 = vsel %vm308_vm11, %v617_v53, %v305_v60 }
  0xad   : > { %v335_v0 = vmul.f32 %v792_v3, %v309_v62 }
  0xaf   : > { %v336_v2 = vpack.c.bf16 %v335_v0, %v334_v63 }
  0xb1   : > { %527 = vmatmul.msk.bf16.vlgmr.msra.gmra.mxu0 %vm281_vm0, %v336_v2  ;;  %vm379_vm0 = vmand %vm374_vm13, %vm378_vm14 }
 0x12e   : > { %v355_v8 = vpop.f32.mrf.mxu0 }
 0x12f   : > { %v381_v3 = vsel %vm379_vm0, %v355_v8, -1.0 }
 0x136   : > { %v357_v1 = vpop.f32.mrf.mxu0 }
 0x137   : > { %v382_v10 = vsel %vm380_vm1, %v357_v1, -1.0 }
 0x138   : > { %v549_v11 = vpack.c.bf16 %v382_v10, %v381_v3 }
 0x13a   : > { %550 = vst [vmem:[%s245_s8] sm:$0xff] %v549_v11  }
 0x13b   : > { %645 = shalt.err (!%p642_p5)
}
 0x13c   : > { %s699_s26 = smov 64   ;;  %s700_s29 = smov 4  }
 0x13d   : > { %552 = dma.vmem_to_hbm [thread:$0]  (%p766_p4), %s402_s9, 128, %s404_s10, %s388_s18, %s699_s26, %s699_s26, %s700_s29  }
 0x13e PF: > { %p558_p6 = scmp.ge.s32.totalorder %s696_s20, 2  ;;  %s418_s30 = sand.u32 1, %s676_s15  }
 0x13f   : > { %s419_s5 = scalar_lea.sflag [#allocation3], %s418_s30 }
 0x140   : > { %p555_p7 = pnand %p558_p6, %p773_p8 }
 0x142   : > { %p556_p9 = pneg %p555_p7 }
 0x144   : > { %671 = dma.done.wait (%p556_p9), %s419_s5, 128  }
 0x145   : > { %673 = vsyncadd (%p556_p9), %s419_s5, 4294967168  ;;  %s17_s20 = sadd.s32 1, %s696_s20   ;;  %s861_s15 = smov %s680_s16 }
 0x146   : > { %p14_p10 = scmp.ge.s32.totalorder %s17_s20, 4   ;;  %s862_s16 = smov %s684_s17 }
 0x147   : > { %s863_s17 = smov %s779_s28  ;;  %s864_s18 = smov %s692_s19 }
 0x148   : > { %s865_s19 = smov %s867_s23  ;;  %16 = sbr.rel (!%p14_p10) target bundleno = 4 (0x4), region = 80 }
 0x14d   :  { %425 = vsyncpa [#allocation3], 1 }
 0x14e   :  { %427 = vsyncpa [#allocation3 + $0x1], 1 }

</bundles_post_ra>
